<compile_context>
chip_gen: v6e
topology: v6e:2x2x1
jax: 0.10.0
libtpu: 0.0.40
codegen_flags: <defaults>
</compile_context>

<pallas_src>
import math
from functools import partial

import jax
import jax.numpy as jnp
from jax.experimental import pallas as pl
from jax.experimental.pallas import tpu as pltpu


# ----------------------------------------------------------------------------
# Fused kernel: the whole layer stack for one batch element.
#   x_ref : (Cmax, rows0)     bf16, flat padded input at pitch P
#   w_ref : (T, Cmax, Cmax)   bf16, per-tap weights (BN scale pre-folded),
#                             all layers concatenated along axis 0
#   s_ref : (Cmax, n_layers)  f32, BN shifts
#   o_ref : (Cmax, m_last)    f32, flat output (pitch P, garbage cols incl.)
# ----------------------------------------------------------------------------
def _fused_kernel(x_ref, w_ref, s_ref, o_ref, *, layers, pitch, m_out,
                  out_h, out_w, tap_base):
    n_layers = len(layers)
    P = pitch
    x_val = x_ref[...]                                # (Cmax, rows0) bf16

    for i, L in enumerate(layers):
        fs, st, dil = L["fs"], L["st"], L["dil"]
        m = m_out[i]
        cmax = x_val.shape[0]

        # Register-resident accumulation chain over the fs*fs taps.  Each tap
        # is one MXU matmul (Cmax,Cmax) x (Cmax,m) -> f32 (Cmax,m); the lane
        # shift for the tap offset rides the XLU slot.
        acc = None
        for kh in range(fs):
            for kw in range(fs):
                off = (kh * P + kw) * dil
                lim = off + (m - 1) * st + 1          # bound checked host-side
                x_tap = jax.lax.slice_in_dim(x_val, off, lim, stride=st,
                                             axis=1)  # (Cmax, m) bf16
                w_tap = w_ref[tap_base[i] + kh * fs + kw]   # (Cmax, Cmax) bf16
                part = jnp.dot(w_tap, x_tap,
                               preferred_element_type=jnp.float32)
                acc = part if acc is None else acc + part

        # Fused BN-shift + ReLU epilogue, still in registers.
        sh = s_ref[:, pl.ds(i, 1)]                    # (Cmax, 1) f32
        act = jnp.maximum(acc + sh, 0.0)              # (Cmax, m) f32

        if i == n_layers - 1:
            o_ref[...] = act.astype(o_ref.dtype)      # single lane-dense store
        else:
            pd_n = layers[i + 1]["pd"]
            if pd_n > 0:
                # Next layer has zero padding: zero the garbage columns
                # (cols >= out_w within each pitch-P row) and re-embed the
                # image at flat offset pd*(P+1) inside a zeroed buffer
                # (== pd zeros on every side at pitch P).
                col = jax.lax.broadcasted_iota(jnp.int32, act.shape, 1) % P
                act = jnp.where(col < out_w[i], act, 0.0)
                rows_next = (out_h[i] + 2 * pd_n - 1) * P + out_w[i] + 2 * pd_n
                buf = jnp.zeros((cmax, rows_next), jnp.float32)
                act = jax.lax.dynamic_update_slice(buf, act,
                                                   (0, pd_n * (P + 1)))
            x_val = act.astype(jnp.bfloat16)          # next layer's input


def _fused_forward_flat(x_flat, w_all, s_all, *, layers, geom, cmax, tap_base):
    N, _, R0 = x_flat.shape
    m_last = geom["m_out"][-1]

    kern = partial(_fused_kernel,
                   layers=tuple(layers), pitch=geom["pitch"],
                   m_out=tuple(geom["m_out"]), out_h=tuple(geom["out_h"]),
                   out_w=tuple(geom["out_w"]), tap_base=tuple(tap_base))

    return pl.pallas_call(
        kern,
        grid=(N,),
        in_specs=[
            pl.BlockSpec((None, cmax, R0), lambda b: (b, 0, 0)),
            pl.BlockSpec(w_all.shape, lambda b: (0, 0, 0)),
            pl.BlockSpec(s_all.shape, lambda b: (0, 0)),
        ],
        out_specs=pl.BlockSpec((None, cmax, m_last), lambda b: (b, 0, 0)),
        out_shape=jax.ShapeDtypeStruct((N, cmax, m_last), jnp.float32),
        compiler_params=pltpu.CompilerParams(
            dimension_semantics=("parallel",),
            vmem_limit_bytes=32 * 1024 * 1024),
    )(x_flat, w_all, s_all)


# ----------------------------------------------------------------------------
# Faithful replication of ExtractedFeatureConv.__init__ layer bookkeeping.
# ----------------------------------------------------------------------------
def build_config(nin, nout, n, expansion_factor=10.0, size_factor=3,
                 pad_factor=0.0, stride_factor=1, dil_factor=1):
    assert n > 1
    nframes = [nin, int(round(nin * expansion_factor))]
    diff = float(nframes[1] - nout) / (n - 1)
    nframes += [int(math.floor(nframes[1] - diff * i)) for i in range(n - 1)]
    layers = []
    for i in range(n):
        decay_factor = 1.0 - (i - 1) / (n - 1)
        fs = int(math.floor(size_factor / (i + 1.0)))
        if fs < 2:
            fs = 2
        st = int(round(stride_factor * i / (n - 1)))
        if st < 1:
            st = 1
        dil = int(round(dil_factor ** i))
        pd = int(round(pad_factor * (fs - 1) * dil_factor * decay_factor))
        layers.append(dict(cin=nframes[i], cout=nframes[i + 1],
                           fs=fs, st=st, pd=pd, dil=dil))
    return layers


def compute_geometry(layers, H, W):
    in_h, in_w = H, W
    out_h, out_w, ph_list, pw_list = [], [], [], []
    for L in layers:
        ph, pw = in_h + 2 * L["pd"], in_w + 2 * L["pd"]
        eff = L["dil"] * (L["fs"] - 1) + 1
        oh, ow = (ph - eff) // L["st"] + 1, (pw - eff) // L["st"] + 1
        assert oh >= 1 and ow >= 1, "layer output collapsed to zero"
        out_h.append(oh); out_w.append(ow)
        ph_list.append(ph); pw_list.append(pw)
        in_h, in_w = oh, ow
    P = max(pw_list)
    m_out = [(oh - 1) * P + ow for oh, ow in zip(out_h, out_w)]

    # Validate the flat-layout read bounds: the furthest element any tap
    # matmul reads (including "garbage" output rows) must lie inside the
    # layer's input buffer; also covers the strided (st>1) upper bound.
    rows_in = ph_list[0] * P
    for i, L in enumerate(layers):
        off_max = (L["fs"] - 1) * L["dil"] * (P + 1)
        assert off_max + (m_out[i] - 1) * L["st"] + 1 <= rows_in, \
            (i, off_max, m_out[i], L["st"], rows_in)
        if i + 1 < len(layers):
            pd_n = layers[i + 1]["pd"]
            if pd_n == 0:
                rows_in = m_out[i]
            else:
                rows_in = (out_h[i] + 2 * pd_n - 1) * P + out_w[i] + 2 * pd_n
    return dict(pitch=P, out_h=out_h, out_w=out_w, m_out=m_out)


def init_params(layers, key):
    """Deterministic synthetic params: conv weights, eval-mode BatchNorm."""
    params = []
    eps = 1e-5
    for L in layers:
        key, k_w, k_g, k_b = jax.random.split(key, 4)
        fan_in = L["cin"] * L["fs"] * L["fs"]
        w = jax.random.normal(
            k_w, (L["fs"], L["fs"], L["cin"], L["cout"]), jnp.float32
        ) / math.sqrt(fan_in)                                      # HWIO
        gamma = jax.random.uniform(k_g, (L["cout"],), jnp.float32, 0.5, 1.5)
        beta = jax.random.normal(k_b, (L["cout"],), jnp.float32) * 0.1
        running_mean = jnp.zeros((L["cout"],), jnp.float32)
        running_var = jnp.ones((L["cout"],), jnp.float32)
        scale = gamma / jnp.sqrt(running_var + eps)
        shift = beta - running_mean * scale
        params.append(dict(w=w, scale=scale, shift=shift))
    return params


def fold_params(layers, params, cmax):
    """Fold BN scale into conv weights (then bf16); build consolidated
    kernel operands: (T, Cmax, Cmax) bf16 taps and (Cmax, n) f32 shifts."""
    taps, shifts = [], []
    for L, Pm in zip(layers, params):
        w = (Pm["w"] * Pm["scale"][None, None, None, :]).astype(jnp.bfloat16)
        t = jnp.transpose(w, (0, 1, 3, 2)).reshape(
            L["fs"] * L["fs"], L["cout"], L["cin"])          # (taps, Cout, Cin)
        t = jnp.pad(t, ((0, 0), (0, cmax - L["cout"]), (0, cmax - L["cin"])))
        taps.append(t)
        shifts.append(jnp.pad(Pm["shift"], (0, cmax - L["cout"])))
    w_all = jnp.concatenate(taps, axis=0)                    # (T, Cmax, Cmax)
    s_all = jnp.stack(shifts, axis=1).astype(jnp.float32)    # (Cmax, n)
    tap_base, base = [], 0
    for L in layers:
        tap_base.append(base)
        base += L["fs"] * L["fs"]
    return w_all, s_all, tap_base


# ----------------------------------------------------------------------------
# Forward pass (NCHW in -> NCHW out, matching PyTorch / ToDense convention).
# ----------------------------------------------------------------------------
def extracted_feature_conv_forward(x_nchw, layers, params):
    N, C0, H, W = x_nchw.shape
    geom = compute_geometry(layers, H, W)
    P = geom["pitch"]
    pd0 = layers[0]["pd"]
    cmax = -(-max(c for L in layers for c in (L["cin"], L["cout"])) // 8) * 8

    # NCHW already matches the channel-major flat layout: pad channels to
    # cmax, zero-pad layer-0 spatial up to (H+2pd, pitch P), flatten rows.
    ph0 = H + 2 * pd0
    x = jnp.pad(x_nchw, ((0, 0), (0, cmax - C0),
                         (pd0, pd0), (pd0, P - W - pd0)))
    x_flat = x.reshape(N, cmax, ph0 * P).astype(jnp.bfloat16)

    w_all, s_all, tap_base = fold_params(layers, params, cmax)
    out_flat = _fused_forward_flat(x_flat, w_all, s_all, layers=layers,
                                   geom=geom, cmax=cmax, tap_base=tap_base)

    # Un-flatten: valid outputs live at flat rows oh*P + ow with ow < out_w.
    oh, ow = geom["out_h"][-1], geom["out_w"][-1]
    c_last = layers[-1]["cout"]
    pad_rows = oh * P - geom["m_out"][-1]
    y = jnp.pad(out_flat, ((0, 0), (0, 0), (0, pad_rows)))
    return y.reshape(N, cmax, oh, P)[:, :c_last, :, :ow]      # NCHW


def reference_forward(x_nchw, layers, params):
    """Pure-JAX reference (lax conv), numerically matched to the kernel:
    BN scale folded into bf16 weights, bf16 activations, f32 accumulation."""
    x = jnp.transpose(x_nchw, (0, 2, 3, 1)).astype(jnp.bfloat16)   # NHWC
    y = None
    for L, Pm in zip(layers, params):
        w = (Pm["w"] * Pm["scale"][None, None, None, :]).astype(jnp.bfloat16)
        y = jax.lax.conv_general_dilated(
            x, w,
            window_strides=(L["st"], L["st"]),
            padding=[(L["pd"], L["pd"]), (L["pd"], L["pd"])],
            rhs_dilation=(L["dil"], L["dil"]),
            dimension_numbers=("NHWC", "HWIO", "NHWC"),
            preferred_element_type=jnp.float32,
            precision=jax.lax.Precision.HIGHEST)
        y = jnp.maximum(y + Pm["shift"], 0.0)      # f32 epilogue
        x = y.astype(jnp.bfloat16)                 # next layer's bf16 input
    return jnp.transpose(y, (0, 3, 1, 2))          # final layer kept in f32


if __name__ == "__main__":
    key = jax.random.PRNGKey(0)
    k_in, k_par = jax.random.split(key)

    # Small module config: nin=4, nout=6, n=3, expansion_factor=3.0,
    # size=(4,16,16) (ndim=2 -> 2-D convolutions), batch=2.
    nin, nout, n = 4, 6, 3
    N, H, W = 2, 16, 16

    layers = build_config(nin, nout, n, expansion_factor=3.0,
                          size_factor=3, pad_factor=0.0,
                          stride_factor=1, dil_factor=1)
    params = init_params(layers, k_par)

    x = jax.random.normal(k_in, (N, nin, H, W), jnp.float32)   # NCHW input

    fwd = jax.jit(lambda xx: extracted_feature_conv_forward(xx, layers, params))
    out = jax.block_until_ready(fwd(x))

    ref = reference_forward(x, layers, params)
    assert out.shape == ref.shape, (out.shape, ref.shape)
    err = float(jnp.max(jnp.abs(out - ref)))
    assert jnp.allclose(out, ref, atol=1e-2, rtol=1e-2), err

    print("KERNEL_OK")
</pallas_src>

<mosaic_0001>
module attributes {stable_mosaic.version = 11 : i64} {
  func.func @_fused_kernel(%arg0: i32, %arg1: memref<1x16x256xbf16, #tpu.memory_space<vmem>>, %arg2: memref<17x16x16xbf16, #tpu.memory_space<vmem>>, %arg3: memref<16x3xf32, #tpu.memory_space<vmem>>, %arg4: memref<1x16x188xf32, #tpu.memory_space<vmem>>) attributes {dimension_semantics = [#tpu.dimension_semantics<parallel>], iteration_bounds = array<i64: 2>, scalar_prefetch = 0 : i64, scratch_operands = 0 : i64, tpu.core_type = #tpu.core_type<tc>, window_params = [{transform_indices = @transform_0, window_bounds = array<i64: 1, 16, 256>}, {pipeline_mode = #tpu.pipeline_mode<synchronous>, transform_indices = @transform_1, window_bounds = array<i64: 17, 16, 16>}, {pipeline_mode = #tpu.pipeline_mode<synchronous>, transform_indices = @transform_2, window_bounds = array<i64: 16, 3>}, {transform_indices = @transform_3, window_bounds = array<i64: 1, 16, 188>}]} {
    %c0 = arith.constant 0 : index
    %c0_0 = arith.constant 0 : index
    %c0_1 = arith.constant 0 : index
    %0 = vector.load %arg1[%c0, %c0_0, %c0_1] : memref<1x16x256xbf16, #tpu.memory_space<vmem>>, vector<1x16x256xbf16>
    %1 = vector.shape_cast %0 : vector<1x16x256xbf16> to vector<16x256xbf16>
    %2 = vector.extract_strided_slice %1 {offsets = [0, 0], sizes = [16, 222], strides = [1, 1]} : vector<16x256xbf16> to vector<16x222xbf16>
    %c0_2 = arith.constant 0 : index
    %c0_3 = arith.constant 0 : index
    %c0_4 = arith.constant 0 : index
    %3 = vector.load %arg2[%c0_2, %c0_3, %c0_4] : memref<17x16x16xbf16, #tpu.memory_space<vmem>>, vector<1x16x16xbf16>
    %4 = vector.shape_cast %3 : vector<1x16x16xbf16> to vector<16x16xbf16>
    %cst = arith.constant dense<0.000000e+00> : vector<16x222xf32>
    %5 = tpu.matmul %4, %2, %cst {dimension_numbers = #tpu.dot_dimension_numbers<[1], [0], [0], [1], [0, 0, 1, 1], [], []>} : vector<16x16xbf16>, vector<16x222xbf16>, vector<16x222xf32> -> vector<16x222xf32>
    %6 = vector.extract_strided_slice %1 {offsets = [0, 1], sizes = [16, 222], strides = [1, 1]} : vector<16x256xbf16> to vector<16x222xbf16>
    %c1 = arith.constant 1 : index
    %c0_5 = arith.constant 0 : index
    %c0_6 = arith.constant 0 : index
    %7 = vector.load %arg2[%c1, %c0_5, %c0_6] : memref<17x16x16xbf16, #tpu.memory_space<vmem>>, vector<1x16x16xbf16>
    %8 = vector.shape_cast %7 : vector<1x16x16xbf16> to vector<16x16xbf16>
    %cst_7 = arith.constant dense<0.000000e+00> : vector<16x222xf32>
    %9 = tpu.matmul %8, %6, %cst_7 {dimension_numbers = #tpu.dot_dimension_numbers<[1], [0], [0], [1], [0, 0, 1, 1], [], []>} : vector<16x16xbf16>, vector<16x222xbf16>, vector<16x222xf32> -> vector<16x222xf32>
    %10 = arith.addf %5, %9 : vector<16x222xf32>
    %11 = vector.extract_strided_slice %1 {offsets = [0, 2], sizes = [16, 222], strides = [1, 1]} : vector<16x256xbf16> to vector<16x222xbf16>
    %c2 = arith.constant 2 : index
    %c0_8 = arith.constant 0 : index
    %c0_9 = arith.constant 0 : index
    %12 = vector.load %arg2[%c2, %c0_8, %c0_9] : memref<17x16x16xbf16, #tpu.memory_space<vmem>>, vector<1x16x16xbf16>
    %13 = vector.shape_cast %12 : vector<1x16x16xbf16> to vector<16x16xbf16>
    %cst_10 = arith.constant dense<0.000000e+00> : vector<16x222xf32>
    %14 = tpu.matmul %13, %11, %cst_10 {dimension_numbers = #tpu.dot_dimension_numbers<[1], [0], [0], [1], [0, 0, 1, 1], [], []>} : vector<16x16xbf16>, vector<16x222xbf16>, vector<16x222xf32> -> vector<16x222xf32>
    %15 = arith.addf %10, %14 : vector<16x222xf32>
    %16 = vector.extract_strided_slice %1 {offsets = [0, 16], sizes = [16, 222], strides = [1, 1]} : vector<16x256xbf16> to vector<16x222xbf16>
    %c3 = arith.constant 3 : index
    %c0_11 = arith.constant 0 : index
    %c0_12 = arith.constant 0 : index
    %17 = vector.load %arg2[%c3, %c0_11, %c0_12] : memref<17x16x16xbf16, #tpu.memory_space<vmem>>, vector<1x16x16xbf16>
    %18 = vector.shape_cast %17 : vector<1x16x16xbf16> to vector<16x16xbf16>
    %cst_13 = arith.constant dense<0.000000e+00> : vector<16x222xf32>
    %19 = tpu.matmul %18, %16, %cst_13 {dimension_numbers = #tpu.dot_dimension_numbers<[1], [0], [0], [1], [0, 0, 1, 1], [], []>} : vector<16x16xbf16>, vector<16x222xbf16>, vector<16x222xf32> -> vector<16x222xf32>
    %20 = arith.addf %15, %19 : vector<16x222xf32>
    %21 = vector.extract_strided_slice %1 {offsets = [0, 17], sizes = [16, 222], strides = [1, 1]} : vector<16x256xbf16> to vector<16x222xbf16>
    %c4 = arith.constant 4 : index
    %c0_14 = arith.constant 0 : index
    %c0_15 = arith.constant 0 : index
    %22 = vector.load %arg2[%c4, %c0_14, %c0_15] : memref<17x16x16xbf16, #tpu.memory_space<vmem>>, vector<1x16x16xbf16>
    %23 = vector.shape_cast %22 : vector<1x16x16xbf16> to vector<16x16xbf16>
    %cst_16 = arith.constant dense<0.000000e+00> : vector<16x222xf32>
    %24 = tpu.matmul %23, %21, %cst_16 {dimension_numbers = #tpu.dot_dimension_numbers<[1], [0], [0], [1], [0, 0, 1, 1], [], []>} : vector<16x16xbf16>, vector<16x222xbf16>, vector<16x222xf32> -> vector<16x222xf32>
    %25 = arith.addf %20, %24 : vector<16x222xf32>
    %26 = vector.extract_strided_slice %1 {offsets = [0, 18], sizes = [16, 222], strides = [1, 1]} : vector<16x256xbf16> to vector<16x222xbf16>
    %c5 = arith.constant 5 : index
    %c0_17 = arith.constant 0 : index
    %c0_18 = arith.constant 0 : index
    %27 = vector.load %arg2[%c5, %c0_17, %c0_18] : memref<17x16x16xbf16, #tpu.memory_space<vmem>>, vector<1x16x16xbf16>
    %28 = vector.shape_cast %27 : vector<1x16x16xbf16> to vector<16x16xbf16>
    %cst_19 = arith.constant dense<0.000000e+00> : vector<16x222xf32>
    %29 = tpu.matmul %28, %26, %cst_19 {dimension_numbers = #tpu.dot_dimension_numbers<[1], [0], [0], [1], [0, 0, 1, 1], [], []>} : vector<16x16xbf16>, vector<16x222xbf16>, vector<16x222xf32> -> vector<16x222xf32>
    %30 = arith.addf %25, %29 : vector<16x222xf32>
    %31 = vector.extract_strided_slice %1 {offsets = [0, 32], sizes = [16, 222], strides = [1, 1]} : vector<16x256xbf16> to vector<16x222xbf16>
    %c6 = arith.constant 6 : index
    %c0_20 = arith.constant 0 : index
    %c0_21 = arith.constant 0 : index
    %32 = vector.load %arg2[%c6, %c0_20, %c0_21] : memref<17x16x16xbf16, #tpu.memory_space<vmem>>, vector<1x16x16xbf16>
    %33 = vector.shape_cast %32 : vector<1x16x16xbf16> to vector<16x16xbf16>
    %cst_22 = arith.constant dense<0.000000e+00> : vector<16x222xf32>
    %34 = tpu.matmul %33, %31, %cst_22 {dimension_numbers = #tpu.dot_dimension_numbers<[1], [0], [0], [1], [0, 0, 1, 1], [], []>} : vector<16x16xbf16>, vector<16x222xbf16>, vector<16x222xf32> -> vector<16x222xf32>
    %35 = arith.addf %30, %34 : vector<16x222xf32>
    %36 = vector.extract_strided_slice %1 {offsets = [0, 33], sizes = [16, 222], strides = [1, 1]} : vector<16x256xbf16> to vector<16x222xbf16>
    %c7 = arith.constant 7 : index
    %c0_23 = arith.constant 0 : index
    %c0_24 = arith.constant 0 : index
    %37 = vector.load %arg2[%c7, %c0_23, %c0_24] : memref<17x16x16xbf16, #tpu.memory_space<vmem>>, vector<1x16x16xbf16>
    %38 = vector.shape_cast %37 : vector<1x16x16xbf16> to vector<16x16xbf16>
    %cst_25 = arith.constant dense<0.000000e+00> : vector<16x222xf32>
    %39 = tpu.matmul %38, %36, %cst_25 {dimension_numbers = #tpu.dot_dimension_numbers<[1], [0], [0], [1], [0, 0, 1, 1], [], []>} : vector<16x16xbf16>, vector<16x222xbf16>, vector<16x222xf32> -> vector<16x222xf32>
    %40 = arith.addf %35, %39 : vector<16x222xf32>
    %41 = vector.extract_strided_slice %1 {offsets = [0, 34], sizes = [16, 222], strides = [1, 1]} : vector<16x256xbf16> to vector<16x222xbf16>
    %c8 = arith.constant 8 : index
    %c0_26 = arith.constant 0 : index
    %c0_27 = arith.constant 0 : index
    %42 = vector.load %arg2[%c8, %c0_26, %c0_27] : memref<17x16x16xbf16, #tpu.memory_space<vmem>>, vector<1x16x16xbf16>
    %43 = vector.shape_cast %42 : vector<1x16x16xbf16> to vector<16x16xbf16>
    %cst_28 = arith.constant dense<0.000000e+00> : vector<16x222xf32>
    %44 = tpu.matmul %43, %41, %cst_28 {dimension_numbers = #tpu.dot_dimension_numbers<[1], [0], [0], [1], [0, 0, 1, 1], [], []>} : vector<16x16xbf16>, vector<16x222xbf16>, vector<16x222xf32> -> vector<16x222xf32>
    %45 = arith.addf %40, %44 : vector<16x222xf32>
    %c0_29 = arith.constant 0 : index
    %c0_30 = arith.constant 0 : index
    %46 = vector.load %arg3[%c0_29, %c0_30] : memref<16x3xf32, #tpu.memory_space<vmem>>, vector<16x1xf32>
    %47 = vector.broadcast %46 : vector<16x1xf32> to vector<16x222xf32>
    %48 = arith.addf %45, %47 : vector<16x222xf32>
    %cst_31 = arith.constant 0.000000e+00 : f32
    %49 = vector.broadcast %cst_31 : f32 to vector<16x222xf32>
    %50 = arith.maximumf %48, %49 : vector<16x222xf32>
    %51 = arith.truncf %50 : vector<16x222xf32> to vector<16x222xbf16>
    %52 = vector.extract_strided_slice %51 {offsets = [0, 0], sizes = [16, 205], strides = [1, 1]} : vector<16x222xbf16> to vector<16x205xbf16>
    %c9 = arith.constant 9 : index
    %c0_32 = arith.constant 0 : index
    %c0_33 = arith.constant 0 : index
    %53 = vector.load %arg2[%c9, %c0_32, %c0_33] : memref<17x16x16xbf16, #tpu.memory_space<vmem>>, vector<1x16x16xbf16>
    %54 = vector.shape_cast %53 : vector<1x16x16xbf16> to vector<16x16xbf16>
    %cst_34 = arith.constant dense<0.000000e+00> : vector<16x205xf32>
    %55 = tpu.matmul %54, %52, %cst_34 {dimension_numbers = #tpu.dot_dimension_numbers<[1], [0], [0], [1], [0, 0, 1, 1], [], []>} : vector<16x16xbf16>, vector<16x205xbf16>, vector<16x205xf32> -> vector<16x205xf32>
    %56 = vector.extract_strided_slice %51 {offsets = [0, 1], sizes = [16, 205], strides = [1, 1]} : vector<16x222xbf16> to vector<16x205xbf16>
    %c10 = arith.constant 10 : index
    %c0_35 = arith.constant 0 : index
    %c0_36 = arith.constant 0 : index
    %57 = vector.load %arg2[%c10, %c0_35, %c0_36] : memref<17x16x16xbf16, #tpu.memory_space<vmem>>, vector<1x16x16xbf16>
    %58 = vector.shape_cast %57 : vector<1x16x16xbf16> to vector<16x16xbf16>
    %cst_37 = arith.constant dense<0.000000e+00> : vector<16x205xf32>
    %59 = tpu.matmul %58, %56, %cst_37 {dimension_numbers = #tpu.dot_dimension_numbers<[1], [0], [0], [1], [0, 0, 1, 1], [], []>} : vector<16x16xbf16>, vector<16x205xbf16>, vector<16x205xf32> -> vector<16x205xf32>
    %60 = arith.addf %55, %59 : vector<16x205xf32>
    %61 = vector.extract_strided_slice %51 {offsets = [0, 16], sizes = [16, 205], strides = [1, 1]} : vector<16x222xbf16> to vector<16x205xbf16>
    %c11 = arith.constant 11 : index
    %c0_38 = arith.constant 0 : index
    %c0_39 = arith.constant 0 : index
    %62 = vector.load %arg2[%c11, %c0_38, %c0_39] : memref<17x16x16xbf16, #tpu.memory_space<vmem>>, vector<1x16x16xbf16>
    %63 = vector.shape_cast %62 : vector<1x16x16xbf16> to vector<16x16xbf16>
    %cst_40 = arith.constant dense<0.000000e+00> : vector<16x205xf32>
    %64 = tpu.matmul %63, %61, %cst_40 {dimension_numbers = #tpu.dot_dimension_numbers<[1], [0], [0], [1], [0, 0, 1, 1], [], []>} : vector<16x16xbf16>, vector<16x205xbf16>, vector<16x205xf32> -> vector<16x205xf32>
    %65 = arith.addf %60, %64 : vector<16x205xf32>
    %66 = vector.extract_strided_slice %51 {offsets = [0, 17], sizes = [16, 205], strides = [1, 1]} : vector<16x222xbf16> to vector<16x205xbf16>
    %c12 = arith.constant 12 : index
    %c0_41 = arith.constant 0 : index
    %c0_42 = arith.constant 0 : index
    %67 = vector.load %arg2[%c12, %c0_41, %c0_42] : memref<17x16x16xbf16, #tpu.memory_space<vmem>>, vector<1x16x16xbf16>
    %68 = vector.shape_cast %67 : vector<1x16x16xbf16> to vector<16x16xbf16>
    %cst_43 = arith.constant dense<0.000000e+00> : vector<16x205xf32>
    %69 = tpu.matmul %68, %66, %cst_43 {dimension_numbers = #tpu.dot_dimension_numbers<[1], [0], [0], [1], [0, 0, 1, 1], [], []>} : vector<16x16xbf16>, vector<16x205xbf16>, vector<16x205xf32> -> vector<16x205xf32>
    %70 = arith.addf %65, %69 : vector<16x205xf32>
    %c0_44 = arith.constant 0 : index
    %c1_45 = arith.constant 1 : index
    %71 = vector.load %arg3[%c0_44, %c1_45] : memref<16x3xf32, #tpu.memory_space<vmem>>, vector<16x1xf32>
    %72 = vector.broadcast %71 : vector<16x1xf32> to vector<16x205xf32>
    %73 = arith.addf %70, %72 : vector<16x205xf32>
    %cst_46 = arith.constant 0.000000e+00 : f32
    %74 = vector.broadcast %cst_46 : f32 to vector<16x205xf32>
    %75 = arith.maximumf %73, %74 : vector<16x205xf32>
    %76 = arith.truncf %75 : vector<16x205xf32> to vector<16x205xbf16>
    %77 = vector.extract_strided_slice %76 {offsets = [0, 0], sizes = [16, 188], strides = [1, 1]} : vector<16x205xbf16> to vector<16x188xbf16>
    %c13 = arith.constant 13 : index
    %c0_47 = arith.constant 0 : index
    %c0_48 = arith.constant 0 : index
    %78 = vector.load %arg2[%c13, %c0_47, %c0_48] : memref<17x16x16xbf16, #tpu.memory_space<vmem>>, vector<1x16x16xbf16>
    %79 = vector.shape_cast %78 : vector<1x16x16xbf16> to vector<16x16xbf16>
    %cst_49 = arith.constant dense<0.000000e+00> : vector<16x188xf32>
    %80 = tpu.matmul %79, %77, %cst_49 {dimension_numbers = #tpu.dot_dimension_numbers<[1], [0], [0], [1], [0, 0, 1, 1], [], []>} : vector<16x16xbf16>, vector<16x188xbf16>, vector<16x188xf32> -> vector<16x188xf32>
    %81 = vector.extract_strided_slice %76 {offsets = [0, 1], sizes = [16, 188], strides = [1, 1]} : vector<16x205xbf16> to vector<16x188xbf16>
    %c14 = arith.constant 14 : index
    %c0_50 = arith.constant 0 : index
    %c0_51 = arith.constant 0 : index
    %82 = vector.load %arg2[%c14, %c0_50, %c0_51] : memref<17x16x16xbf16, #tpu.memory_space<vmem>>, vector<1x16x16xbf16>
    %83 = vector.shape_cast %82 : vector<1x16x16xbf16> to vector<16x16xbf16>
    %cst_52 = arith.constant dense<0.000000e+00> : vector<16x188xf32>
    %84 = tpu.matmul %83, %81, %cst_52 {dimension_numbers = #tpu.dot_dimension_numbers<[1], [0], [0], [1], [0, 0, 1, 1], [], []>} : vector<16x16xbf16>, vector<16x188xbf16>, vector<16x188xf32> -> vector<16x188xf32>
    %85 = arith.addf %80, %84 : vector<16x188xf32>
    %86 = vector.extract_strided_slice %76 {offsets = [0, 16], sizes = [16, 188], strides = [1, 1]} : vector<16x205xbf16> to vector<16x188xbf16>
    %c15 = arith.constant 15 : index
    %c0_53 = arith.constant 0 : index
    %c0_54 = arith.constant 0 : index
    %87 = vector.load %arg2[%c15, %c0_53, %c0_54] : memref<17x16x16xbf16, #tpu.memory_space<vmem>>, vector<1x16x16xbf16>
    %88 = vector.shape_cast %87 : vector<1x16x16xbf16> to vector<16x16xbf16>
    %cst_55 = arith.constant dense<0.000000e+00> : vector<16x188xf32>
    %89 = tpu.matmul %88, %86, %cst_55 {dimension_numbers = #tpu.dot_dimension_numbers<[1], [0], [0], [1], [0, 0, 1, 1], [], []>} : vector<16x16xbf16>, vector<16x188xbf16>, vector<16x188xf32> -> vector<16x188xf32>
    %90 = arith.addf %85, %89 : vector<16x188xf32>
    %91 = vector.extract_strided_slice %76 {offsets = [0, 17], sizes = [16, 188], strides = [1, 1]} : vector<16x205xbf16> to vector<16x188xbf16>
    %c16 = arith.constant 16 : index
    %c0_56 = arith.constant 0 : index
    %c0_57 = arith.constant 0 : index
    %92 = vector.load %arg2[%c16, %c0_56, %c0_57] : memref<17x16x16xbf16, #tpu.memory_space<vmem>>, vector<1x16x16xbf16>
    %93 = vector.shape_cast %92 : vector<1x16x16xbf16> to vector<16x16xbf16>
    %cst_58 = arith.constant dense<0.000000e+00> : vector<16x188xf32>
    %94 = tpu.matmul %93, %91, %cst_58 {dimension_numbers = #tpu.dot_dimension_numbers<[1], [0], [0], [1], [0, 0, 1, 1], [], []>} : vector<16x16xbf16>, vector<16x188xbf16>, vector<16x188xf32> -> vector<16x188xf32>
    %95 = arith.addf %90, %94 : vector<16x188xf32>
    %c0_59 = arith.constant 0 : index
    %c2_60 = arith.constant 2 : index
    %96 = vector.load %arg3[%c0_59, %c2_60] : memref<16x3xf32, #tpu.memory_space<vmem>>, vector<16x1xf32>
    %97 = vector.broadcast %96 : vector<16x1xf32> to vector<16x188xf32>
    %98 = arith.addf %95, %97 : vector<16x188xf32>
    %cst_61 = arith.constant 0.000000e+00 : f32
    %99 = vector.broadcast %cst_61 : f32 to vector<16x188xf32>
    %100 = arith.maximumf %98, %99 : vector<16x188xf32>
    %c0_62 = arith.constant 0 : index
    %c0_63 = arith.constant 0 : index
    %c0_64 = arith.constant 0 : index
    %101 = vector.load %arg4[%c0_62, %c0_63, %c0_64] : memref<1x16x188xf32, #tpu.memory_space<vmem>>, vector<1x16x188xf32>
    %102 = vector.shape_cast %101 : vector<1x16x188xf32> to vector<16x188xf32>
    %103 = vector.shape_cast %100 : vector<16x188xf32> to vector<1x16x188xf32>
    tpu.vector_store %arg4[%c0_62, %c0_63, %c0_64], %103 {strides = array<i32>} : memref<1x16x188xf32, #tpu.memory_space<vmem>>, vector<1x16x188xf32>,
    return
  }
  func.func @transform_0(%arg0: i32) -> (i32, i32, i32) {
    %c0_i32 = arith.constant 0 : i32
    %c0_i32_0 = arith.constant 0 : i32
    %c0_i32_1 = arith.constant 0 : i32
    return %arg0, %c0_i32, %c0_i32_0 : i32, i32, i32
  }
  func.func @transform_1(%arg0: i32) -> (i32, i32, i32) {
    %c0_i32 = arith.constant 0 : i32
    %c0_i32_0 = arith.constant 0 : i32
    %c0_i32_1 = arith.constant 0 : i32
    %c0_i32_2 = arith.constant 0 : i32
    return %c0_i32, %c0_i32_0, %c0_i32_1 : i32, i32, i32
  }
  func.func @transform_2(%arg0: i32) -> (i32, i32) {
    %c0_i32 = arith.constant 0 : i32
    %c0_i32_0 = arith.constant 0 : i32
    %c0_i32_1 = arith.constant 0 : i32
    return %c0_i32, %c0_i32_0 : i32, i32
  }
  func.func @transform_3(%arg0: i32) -> (i32, i32, i32) {
    %c0_i32 = arith.constant 0 : i32
    %c0_i32_0 = arith.constant 0 : i32
    %c0_i32_1 = arith.constant 0 : i32
    return %arg0, %c0_i32, %c0_i32_0 : i32, i32, i32
  }
}

</mosaic_0001>

<bundles_post_ra>
// kernel: _lambda_.1
= control target key start
LH: loop header
LB: loop body
LE: loop exit
PB: predicated region body
PF: predicated region fallthrough
CT: control target
= control target key end

     0   :  { %s1537_s12 = smov 0   ;;  %s1688_s0 = inlined_call_operand.vmem [shape: bf16[2,16,256], index: 0, kind: input, shape index: {}]   ;;  %s1689_s1 = inlined_call_operand.vmem [shape: bf16[17,16,16], index: 1, kind: input, shape index: {}]   ;;  %s1690_s2 = inlined_call_operand.vmem [shape: f32[16,3], index: 2, kind: input, shape index: {}]   ;;  %s1691_s3 = inlined_call_operand.vmem [shape: f32[2,16,188], index: 3, kind: output, shape index: {}]  }
   0x1 LB: > { %s1372_s13 = sadd.s32 4294967295, %s1504_s12   ;;  %p1376_p0 = scmp.ge.s32.totalorder %s1504_s12, 1  ;;  %s1504_s12 = sphi %s1537_s12, %s13_s12  }
   0x2   : > { %p137_p1 = scmp.lt.s32.totalorder %s1504_s12, 3 }
   0x4   : > { %p138_p2 = pnand %p1376_p0, %p137_p1 }
   0x5   : > { %p161_p3 = scmp.lt.s32.totalorder (!%p138_p2), %s1372_s13, 1  ;;  %s1507_s18 = smov (!%p138_p2), 127  }
   0x6   : > { %141 = sbr.rel (%p138_p2) target bundleno = 1050 (0x41a), region = 32  ;;  %s1508_s19 = smov (!%p138_p2), 126  }
   0x7   : > { %s1509_s22 = smov (!%p138_p2), 112   ;;  %s1510_s23 = smov (!%p138_p2), 111  }
   0x8   : > { %s1511_s24 = smov (!%p138_p2), 110   ;;  %s1512_s25 = smov (!%p138_p2), 96  }
   0x9   : > { %s1513_s26 = smov (!%p138_p2), 95   ;;  %s1514_s27 = smov (!%p138_p2), 94  }
   0xb   : > { %v1506_v0 = vmov 0   ;;  %s1693_s13 = smov (!%p161_p3, %s1372_s13), 1  ;;  %vm200_vm0 = vcmask 130048   ;;  %v1482_v3 = vld [vmem:[%s1689_s1] sm:$0xff]   ;;  %v1574_v5 = vld [vmem:[%s1690_s2 + $0x8] sm:$0xff]  ;;  %vm196_vm1 = vcmask 1039360  }
   0xc   : > { %236 = vmatprep.mubr.bf16.mxu0 %v1506_v0  ;;  %289 = vmatprep.mubr.bf16.mxu1 %v1506_v0  ;;  %s1451_s14 = sshll.u32 %s1693_s13, 4  ;;  %v1569_v4 = vld [vmem:[%s1690_s2] sm:$0xff]  ;;  %vm312_vm2 = vcmask 1031168   ;;  %v1481_v11 = vld [vmem:[%s1689_s1 + $0x8] sm:$0xff]   ;;  %vm378_vm3 = vcmask 916480   ;;  %v1484_v16 = vld [vmem:[%s1689_s1 + $0x18] sm:$0xff]  }
   0xd   : > { %1472 = vset.pattern.permute.xlu0 %v1506_v0  ;;  %1473 = vset.pattern.permute.xlu1 %v1506_v0  ;;  %s165_s17 = scalar_lea.vmem %s1688_s0, %s1451_s14  ;;  %vm444_vm4 = vcmask 908288   ;;  %v1483_v19 = vld [vmem:[%s1689_s1 + $0x10] sm:$0xff]   ;;  %vm510_vm5 = vcmask 900096   ;;  %v1486_v24 = vld [vmem:[%s1689_s1 + $0x28] sm:$0xff]   ;;  %vm576_vm6 = vcmask 785408   ;;  %v1485_v27 = vld [vmem:[%s1689_s1 + $0x20] sm:$0xff]  }
   0xe   : > { %v1478_v1 = vld [vmem:[%s165_s17] ss:$8 sps:$4 sm:$0xff]   ;;  %v1480_v2 = vld [vmem:[%s165_s17 + $0x4] ss:$8 sps:$4 sm:$0xff]   ;;  %vm642_vm7 = vcmask 777216   ;;  %v1488_v32 = vld [vmem:[%s1689_s1 + $0x38] sm:$0xff]  }
   0xf   : > { %192 = vrot.lane.b32.xlu0 %v1478_v1, %s1507_s18  ;;  %308 = vrot.lane.b32.xlu1 %v1478_v1, %s1508_s19  ;;  %vm708_vm8 = vcmask 769024   ;;  %v1487_v35 = vld [vmem:[%s1689_s1 + $0x30] sm:$0xff]   ;;  %v1489_v37 = vld [vmem:[%s1689_s1 + $0x40] sm:$0xff]   ;;  %s1452_s14 = sshll.u32 %s1693_s13, 5  ;;  %vm1313_vm9 = vcmask 490496  }
  0x10   : > { %271 = vmatprep.subr.bf16.mxu1 %v1480_v2  ;;  %s170_s17 = scalar_lea.vmem %s1691_s3, %s1452_s14 }
  0x11   : > { %272 = vmatpush1.bf16.msra.mxu1 %v1478_v1 }
  0x13   : > { %194 = vrot.lane.b32.xlu0 %v1480_v2, %s1507_s18  ;;  %310 = vrot.lane.b32.xlu1 %v1480_v2, %s1508_s19 }
  0x14   : > { %1388 = vmatmul.mubr.msk.bf16.vlgmr.msra.gmra.mxu1 %vm200_vm0, %v1482_v3 }
  0x15   : > { %417 = vmatprep.mubr.bf16.mxu1 %v1506_v0 }
  0x17   : > { %376 = vrot.lane.b32.xlu1 %v1480_v2, %s1509_s22  ;;  %374 = vrot.lane.b32.xlu0 %v1478_v1, %s1509_s22 }
  0x1b   : > { %442 = vrot.lane.b32.xlu1 %v1480_v2, %s1510_s23  ;;  %440 = vrot.lane.b32.xlu0 %v1478_v1, %s1510_s23 }
  0x1f   : > { %508 = vrot.lane.b32.xlu1 %v1480_v2, %s1511_s24  ;;  %506 = vrot.lane.b32.xlu0 %v1478_v1, %s1511_s24 }
  0x23   : > { %574 = vrot.lane.b32.xlu1 %v1480_v2, %s1512_s25  ;;  %572 = vrot.lane.b32.xlu0 %v1478_v1, %s1512_s25 }
  0x27   : > { %640 = vrot.lane.b32.xlu1 %v1480_v2, %s1513_s26  ;;  %638 = vrot.lane.b32.xlu0 %v1478_v1, %s1513_s26 }
  0x2b   : > { %706 = vrot.lane.b32.xlu1 %v1480_v2, %s1514_s27  ;;  %704 = vrot.lane.b32.xlu0 %v1478_v1, %s1514_s27 }
  0x2f   : > { %766 = vperm.xlu0 %1472, %v1569_v4   ;;  %771 = vperm.xlu1 %1473, %v1574_v5  }
  0x81   : > { %v193_v6 = vpop.permute.xlu0 %192  ;;  %v309_v7 = vpop.permute.xlu1 %308 }
  0x85   : > { %v195_v8 = vpop.permute.xlu0 %194  ;;  %v311_v9 = vpop.permute.xlu1 %310 }
  0x86   : > { %218 = vmatprep.subr.bf16.mxu0 %v195_v8  ;;  %v197_v10 = vsel %vm196_vm1, %v193_v6, %v195_v8  ;;  %v313_v12 = vsel %vm312_vm2, %v309_v7, %v311_v9 }
  0x87   : > { %219 = vmatpush1.bf16.msra.mxu0 %v197_v10 }
  0x88   : > { %333 = vmatprep.subr.bf16.mxu0 %v311_v9 }
  0x89   : > { %v377_v13 = vpop.permute.xlu1 %376  ;;  %v375_v14 = vpop.permute.xlu0 %374 }
  0x8a   : > { %1386 = vmatmul.mubr.msk.bf16.vlgmr.msra.gmra.mxu0 %vm200_vm0, %v1481_v11  ;;  %v379_v15 = vsel %vm378_vm3, %v375_v14, %v377_v13  ;;  %399 = vmatprep.subr.bf16.mxu1 %v377_v13 }
  0x8b   : > { %334 = vmatpush1.bf16.msra.mxu0 %v313_v12  ;;  %400 = vmatpush1.bf16.msra.mxu1 %v379_v15 }
  0x8c   : > { %351 = vmatprep.mubr.bf16.mxu0 %v1506_v0 }
  0x8d   : > { %v443_v17 = vpop.permute.xlu1 %442  ;;  %v441_v18 = vpop.permute.xlu0 %440 }
  0x8e   : > { %1396 = vmatmul.mubr.msk.bf16.vlgmr.msra.gmra.mxu1 %vm200_vm0, %v1484_v16  ;;  %465 = vmatprep.subr.bf16.mxu0 %v443_v17  ;;  %v445_v20 = vsel %vm444_vm4, %v441_v18, %v443_v17 }
  0x8f   : > { %549 = vmatprep.mubr.bf16.mxu1 %v1506_v0 }
  0x91   : > { %v509_v21 = vpop.permute.xlu1 %508  ;;  %v507_v22 = vpop.permute.xlu0 %506 }
  0x92   : > { %1392 = vmatmul.mubr.msk.bf16.vlgmr.msra.gmra.mxu0 %vm200_vm0, %v1483_v19  ;;  %v511_v23 = vsel %vm510_vm5, %v507_v22, %v509_v21  ;;  %531 = vmatprep.subr.bf16.mxu1 %v509_v21 }
  0x93   : > { %466 = vmatpush1.bf16.msra.mxu0 %v445_v20  ;;  %532 = vmatpush1.bf16.msra.mxu1 %v511_v23 }
  0x94   : > { %483 = vmatprep.mubr.bf16.mxu0 %v1506_v0 }
  0x95   : > { %v575_v25 = vpop.permute.xlu1 %574  ;;  %v573_v26 = vpop.permute.xlu0 %572 }
  0x96   : > { %1404 = vmatmul.mubr.msk.bf16.vlgmr.msra.gmra.mxu1 %vm200_vm0, %v1486_v24  ;;  %597 = vmatprep.subr.bf16.mxu0 %v575_v25  ;;  %v577_v28 = vsel %vm576_vm6, %v573_v26, %v575_v25 }
  0x97   : > { %681 = vmatprep.mubr.bf16.mxu1 %v1506_v0 }
  0x99   : > { %v641_v29 = vpop.permute.xlu1 %640  ;;  %v639_v30 = vpop.permute.xlu0 %638 }
  0x9a   : > { %1400 = vmatmul.mubr.msk.bf16.vlgmr.msra.gmra.mxu0 %vm200_vm0, %v1485_v27  ;;  %v643_v31 = vsel %vm642_vm7, %v639_v30, %v641_v29  ;;  %663 = vmatprep.subr.bf16.mxu1 %v641_v29 }
  0x9b   : > { %598 = vmatpush1.bf16.msra.mxu0 %v577_v28  ;;  %664 = vmatpush1.bf16.msra.mxu1 %v643_v31 }
  0x9c   : > { %615 = vmatprep.mubr.bf16.mxu0 %v1506_v0 }
  0x9d   : > { %v707_v33 = vpop.permute.xlu1 %706  ;;  %v705_v34 = vpop.permute.xlu0 %704 }
  0x9e   : > { %1412 = vmatmul.mubr.msk.bf16.vlgmr.msra.gmra.mxu1 %vm200_vm0, %v1488_v32  ;;  %729 = vmatprep.subr.bf16.mxu0 %v707_v33  ;;  %v709_v36 = vsel %vm708_vm8, %v705_v34, %v707_v33 }
  0x9f   : > { %839 = vmatprep.mubr.bf16.mxu1 %v1506_v0 }
  0xa2   : > { %1408 = vmatmul.mubr.msk.bf16.vlgmr.msra.gmra.mxu0 %vm200_vm0, %v1487_v35 }
  0xa3   : > { %730 = vmatpush1.bf16.msra.mxu0 %v709_v36  ;;  %747 = vmatprep.mubr.bf16.mxu0 %v1506_v0 }
  0xaa   : > { %1416 = vmatmul.mubr.msk.bf16.vlgmr.msra.gmra.mxu0 %vm200_vm0, %v1489_v37  ;;  %v767_v37 = vpop.permute.xlu0 %766 }
  0xab   : > { %890 = vmatprep.mubr.bf16.mxu0 %v1506_v0 }
  0xd4   : > { %v291_v38 = vpop.f32.mrf.mxu1 }
  0xd6   : > { %v293_v39 = vpop.f32.mrf.mxu1 }
  0xd8   : > { %v295_v40 = vpop.f32.mrf.mxu1 }
  0xda   : > { %v297_v42 = vpop.f32.mrf.mxu1 }
 0x14a   : > { %v238_v41 = vpop.f32.mrf.mxu0 }
 0x14b   : > { %v292_v54 = vadd.f32 %v291_v38, %v238_v41 }
 0x14c   : > { %v240_v43 = vpop.f32.mrf.mxu0 }
 0x14d   : > { %v294_v57 = vadd.f32 %v293_v39, %v240_v43 }
 0x14e   : > { %v242_v44 = vpop.f32.mrf.mxu0  ;;  %v419_v45 = vpop.f32.mrf.mxu1 }
 0x14f   : > { %v296_v61 = vadd.f32 %v295_v40, %v242_v44  ;;  %v772_v40 = vpop.permute.xlu1 %771 }
 0x150   : > { %v244_v46 = vpop.f32.mrf.mxu0  ;;  %v421_v47 = vpop.f32.mrf.mxu1 }
 0x151   : > { %v298_v1 = vadd.f32 %v297_v42, %v244_v46 }
 0x152   : > { %v353_v48 = vpop.f32.mrf.mxu0  ;;  %v423_v49 = vpop.f32.mrf.mxu1 }
 0x153   : > { %v362_v58 = vadd.f32 %v353_v48, %v292_v54 }
 0x154   : > { %v355_v50 = vpop.f32.mrf.mxu0  ;;  %v425_v51 = vpop.f32.mrf.mxu1 }
 0x155   : > { %v363_v62 = vadd.f32 %v355_v50, %v294_v57  ;;  %v428_v2 = vadd.f32 %v419_v45, %v362_v58  ;;  %v1490_v57 = vld [vmem:[%s1689_s1 + $0x48] sm:$0xff]   ;;  %v1515_v58 = vmov 1  }
 0x156   : > { %v357_v52 = vpop.f32.mrf.mxu0  ;;  %v551_v53 = vpop.f32.mrf.mxu1  ;;  %1474 = vset.pattern.permute.xlu1 %v1515_v58  ;;  %1475 = vset.pattern.permute.xlu0 %v1515_v58 }
 0x157   : > { %v364_v3 = vadd.f32 %v357_v52, %v296_v61  ;;  %v429_v8 = vadd.f32 %v421_v47, %v363_v62  ;;  %v1491_v62 = vld [vmem:[%s1689_s1 + $0x50] sm:$0xff]  }
 0x158   : > { %v359_v55 = vpop.f32.mrf.mxu0  ;;  %v553_v56 = vpop.f32.mrf.mxu1 }
 0x159   : > { %v365_v9 = vadd.f32 %v359_v55, %v298_v1  ;;  %v430_v12 = vadd.f32 %v423_v49, %v364_v3 }
 0x15a   : > { %v485_v59 = vpop.f32.mrf.mxu0  ;;  %v555_v60 = vpop.f32.mrf.mxu1 }
 0x15b   : > { %v494_v10 = vadd.f32 %v485_v59, %v428_v2  ;;  %v431_v16 = vadd.f32 %v425_v51, %v365_v9  ;;  %v1493_v9 = vld [vmem:[%s1689_s1 + $0x60] sm:$0xff]  }
 0x15c   : > { %v487_v63 = vpop.f32.mrf.mxu0  ;;  %v557_v7 = vpop.f32.mrf.mxu1 }
 0x15d   : > { %v495_v13 = vadd.f32 %v487_v63, %v429_v8  ;;  %v560_v17 = vadd.f32 %v551_v53, %v494_v10  ;;  %v1492_v8 = vld [vmem:[%s1689_s1 + $0x58] sm:$0xff]  }
 0x15e   : > { %v489_v6 = vpop.f32.mrf.mxu0  ;;  %v683_v15 = vpop.f32.mrf.mxu1 }
 0x15f   : > { %v496_v18 = vadd.f32 %v489_v6, %v430_v12  ;;  %v561_v20 = vadd.f32 %v553_v56, %v495_v13 }
 0x160   : > { %v491_v11 = vpop.f32.mrf.mxu0  ;;  %v685_v23 = vpop.f32.mrf.mxu1 }
 0x161   : > { %v497_v21 = vadd.f32 %v491_v11, %v431_v16  ;;  %v562_v25 = vadd.f32 %v555_v60, %v496_v18 }
 0x162   : > { %v617_v14 = vpop.f32.mrf.mxu0  ;;  %v687_v31 = vpop.f32.mrf.mxu1 }
 0x163   : > { %v626_v22 = vadd.f32 %v617_v14, %v560_v17  ;;  %v563_v28 = vadd.f32 %v557_v7, %v497_v21 }
 0x164   : > { %v619_v19 = vpop.f32.mrf.mxu0  ;;  %v689_v41 = vpop.f32.mrf.mxu1 }
 0x165   : > { %v627_v26 = vadd.f32 %v619_v19, %v561_v20  ;;  %v692_v29 = vadd.f32 %v683_v15, %v626_v22 }
 0x166   : > { %v621_v24 = vpop.f32.mrf.mxu0 }
 0x167   : > { %v628_v30 = vadd.f32 %v621_v24, %v562_v25  ;;  %v693_v33 = vadd.f32 %v685_v23, %v627_v26 }
 0x168   : > { %v623_v27 = vpop.f32.mrf.mxu0 }
 0x169   : > { %v629_v34 = vadd.f32 %v623_v27, %v563_v28  ;;  %v694_v38 = vadd.f32 %v687_v31, %v628_v30 }
 0x16a   : > { %v749_v32 = vpop.f32.mrf.mxu0 }
 0x16b   : > { %v758_v35 = vadd.f32 %v749_v32, %v692_v29  ;;  %v695_v43 = vadd.f32 %v689_v41, %v629_v34 }
 0x16c   : > { %v751_v36 = vpop.f32.mrf.mxu0 }
 0x16d   : > { %v759_v39 = vadd.f32 %v751_v36, %v693_v33  ;;  %v774_v44 = vadd.f32 %v767_v37, %v758_v35 }
 0x16e   : > { %v753_v42 = vpop.f32.mrf.mxu0 }
 0x16f   : > { %v760_v45 = vadd.f32 %v753_v42, %v694_v38  ;;  %v775_v47 = vadd.f32 %v767_v37, %v759_v39  ;;  %v778_v50 = vmax.f32 %v774_v44, 0.0 }
 0x170   : > { %v755_v46 = vpop.f32.mrf.mxu0 }
 0x171   : > { %v776_v48 = vadd.f32 %v772_v40, %v760_v45  ;;  %v761_v49 = vadd.f32 %v755_v46, %v695_v43  ;;  %v779_v53 = vmax.f32 %v775_v47, 0.0 }
 0x173   : > { %v780_v51 = vmax.f32 %v776_v48, 0.0  ;;  %v777_v52 = vadd.f32 %v772_v40, %v761_v49 }
 0x175   : > { %v782_v54 = vpack.c.bf16 %v780_v51, %v778_v50  ;;  %v781_v55 = vmax.f32 %v777_v52, 0.0  ;;  %v1495_v50 = vld [vmem:[%s1689_s1 + $0x68] sm:$0xff]   ;;  %v1516_v51 = vmov 2  }
 0x177   : > { %v783_v56 = vpack.c.bf16 %v781_v55, %v779_v53  ;;  %797 = vrot.lane.b32.xlu1 %v782_v54, %s1507_s18  ;;  %v1494_v55 = vld [vmem:[%s1689_s1 + $0x70] sm:$0xff]  }
 0x179   : > { %799 = vrot.lane.b32.xlu0 %v783_v56, %s1507_s18  ;;  %872 = vmatprep.subr.bf16.mxu0 %v783_v56 }
 0x17a   : > { %873 = vmatpush1.bf16.msra.mxu0 %v782_v54 }
 0x17b   : > { %909 = vrot.lane.b32.xlu1 %v782_v54, %s1509_s22 }
 0x17d   : > { %911 = vrot.lane.b32.xlu0 %v783_v56, %s1509_s22  ;;  %1424 = vmatmul.mubr.msk.bf16.vlgmr.msra.gmra.mxu0 %vm200_vm0, %v1490_v57 }
 0x17e   : > { %1016 = vmatprep.mubr.bf16.mxu0 %v1506_v0 }
 0x17f   : > { %974 = vrot.lane.b32.xlu1 %v782_v54, %s1510_s23 }
 0x181   : > { %976 = vrot.lane.b32.xlu0 %v783_v56, %s1510_s23 }
 0x183   : > { %1032 = vperm.xlu1 %1474, %v1569_v4  }
 0x185   : > { %1036 = vperm.xlu0 %1475, %v1574_v5  }
 0x187   : > { %1477 = vset.pattern.permute.xlu1 %v1516_v51 }
 0x189   : > { %1476 = vset.pattern.permute.xlu0 %v1516_v51 }
 0x1e9   : > { %v798_v59 = vpop.permute.xlu1 %797 }
 0x1eb   : > { %v800_v60 = vpop.permute.xlu0 %799 }
 0x1ec   : > { %v801_v61 = vsel %vm196_vm1, %v798_v59, %v800_v60  ;;  %821 = vmatprep.subr.bf16.mxu1 %v800_v60  ;;  %v1496_v60 = vld [vmem:[%s1689_s1 + $0x78] sm:$0xff]  }
 0x1ed   : > { %822 = vmatpush1.bf16.msra.mxu1 %v801_v61  ;;  %v910_v63 = vpop.permute.xlu1 %909  ;;  %v1497_v61 = vld [vmem:[%s1689_s1 + $0x80] sm:$0xff]  }
 0x1ef   : > { %v912_v1 = vpop.permute.xlu0 %911 }
 0x1f0   : > { %v913_v2 = vsel %vm378_vm3, %v910_v63, %v912_v1  ;;  %1422 = vmatmul.mubr.msk.bf16.vlgmr.msra.gmra.mxu1 %vm200_vm0, %v1491_v62  ;;  %933 = vmatprep.subr.bf16.mxu1 %v912_v1 }
 0x1f1   : > { %934 = vmatpush1.bf16.msra.mxu1 %v913_v2  ;;  %951 = vmatprep.mubr.bf16.mxu1 %v1506_v0  ;;  %v975_v3 = vpop.permute.xlu1 %974 }
 0x1f3   : > { %v977_v6 = vpop.permute.xlu0 %976 }
 0x1f4   : > { %v978_v7 = vsel %vm444_vm4, %v975_v3, %v977_v6  ;;  %998 = vmatprep.subr.bf16.mxu0 %v977_v6 }
 0x1f5   : > { %999 = vmatpush1.bf16.msra.mxu0 %v978_v7 }
 0x1f8   : > { %1428 = vmatmul.mubr.msk.bf16.vlgmr.msra.gmra.mxu1 %vm200_vm0, %v1492_v8  ;;  %1432 = vmatmul.mubr.msk.bf16.vlgmr.msra.gmra.mxu0 %vm200_vm0, %v1493_v9 }
 0x1f9   : > { %1104 = vmatprep.mubr.bf16.mxu1 %v1506_v0  ;;  %1155 = vmatprep.mubr.bf16.mxu0 %v1506_v0 }
 0x1fe   : > { %v1033_v28 = vpop.permute.xlu1 %1032 }
 0x200   : > { %v1037_v35 = vpop.permute.xlu0 %1036 }
 0x23d   : > { %v892_v10 = vpop.f32.mrf.mxu0 }
 0x23f   : > { %v894_v11 = vpop.f32.mrf.mxu0 }
 0x241   : > { %v896_v13 = vpop.f32.mrf.mxu0 }
 0x243   : > { %v898_v16 = vpop.f32.mrf.mxu0 }
 0x2b0   : > { %v841_v12 = vpop.f32.mrf.mxu1 }
 0x2b1   : > { %v893_v18 = vadd.f32 %v892_v10, %v841_v12 }
 0x2b2   : > { %v843_v14 = vpop.f32.mrf.mxu1 }
 0x2b3   : > { %v895_v21 = vadd.f32 %v894_v11, %v843_v14 }
 0x2b4   : > { %v845_v15 = vpop.f32.mrf.mxu1 }
 0x2b5   : > { %v897_v25 = vadd.f32 %v896_v13, %v845_v15 }
 0x2b6   : > { %v847_v17 = vpop.f32.mrf.mxu1 }
 0x2b7   : > { %v899_v31 = vadd.f32 %v898_v16, %v847_v17 }
 0x2b8   : > { %v953_v19 = vpop.f32.mrf.mxu1  ;;  %v1018_v20 = vpop.f32.mrf.mxu0 }
 0x2b9   : > { %v962_v22 = vadd.f32 %v953_v19, %v893_v18 }
 0x2ba   : > { %v955_v23 = vpop.f32.mrf.mxu1  ;;  %v1020_v24 = vpop.f32.mrf.mxu0 }
 0x2bb   : > { %v1027_v26 = vadd.f32 %v1018_v20, %v962_v22  ;;  %v963_v27 = vadd.f32 %v955_v23, %v895_v21 }
 0x2bc   : > { %v957_v29 = vpop.f32.mrf.mxu1  ;;  %v1022_v30 = vpop.f32.mrf.mxu0 }
 0x2bd   : > { %v1028_v32 = vadd.f32 %v1020_v24, %v963_v27  ;;  %v964_v33 = vadd.f32 %v957_v29, %v897_v25  ;;  %v1039_v36 = vadd.f32 %v1033_v28, %v1027_v26 }
 0x2be   : > { %v959_v34 = vpop.f32.mrf.mxu1  ;;  %v1024_v39 = vpop.f32.mrf.mxu0 }
 0x2bf   : > { %v1029_v37 = vadd.f32 %v1022_v30, %v964_v33  ;;  %v965_v38 = vadd.f32 %v959_v34, %v899_v31  ;;  %v1040_v40 = vadd.f32 %v1033_v28, %v1028_v32  ;;  %v1043_v43 = vmax.f32 %v1039_v36, 0.0 }
 0x2c1   : > { %v1030_v41 = vadd.f32 %v1024_v39, %v965_v38  ;;  %v1041_v42 = vadd.f32 %v1037_v35, %v1029_v37  ;;  %v1044_v46 = vmax.f32 %v1040_v40, 0.0 }
 0x2c3   : > { %v1042_v44 = vadd.f32 %v1037_v35, %v1030_v41  ;;  %v1045_v45 = vmax.f32 %v1041_v42, 0.0 }
 0x2c5   : > { %v1046_v47 = vmax.f32 %v1042_v44, 0.0  ;;  %v1047_v48 = vpack.c.bf16 %v1045_v45, %v1043_v43 }
 0x2c7   : > { %v1048_v49 = vpack.c.bf16 %v1046_v47, %v1044_v46  ;;  %1174 = vrot.lane.b32.xlu0 %v1047_v48, %s1509_s22  ;;  %1062 = vrot.lane.b32.xlu1 %v1047_v48, %s1507_s18 }
 0x2c9   : > { %1137 = vmatprep.subr.bf16.mxu0 %v1048_v49 }
 0x2ca   : > { %1138 = vmatpush1.bf16.msra.mxu0 %v1047_v48 }
 0x2cb   : > { %1239 = vrot.lane.b32.xlu0 %v1047_v48, %s1510_s23  ;;  %1064 = vrot.lane.b32.xlu1 %v1048_v49, %s1507_s18 }
 0x2cd   : > { %1440 = vmatmul.mubr.msk.bf16.vlgmr.msra.gmra.mxu0 %vm200_vm0, %v1495_v50 }
 0x2ce   : > { %1281 = vmatprep.mubr.bf16.mxu0 %v1506_v0 }
 0x2cf   : > { %1176 = vrot.lane.b32.xlu1 %v1048_v49, %s1509_s22  ;;  %1297 = vperm.xlu0 %1476, %v1569_v4  }
 0x2d3   : > { %1241 = vrot.lane.b32.xlu1 %v1048_v49, %s1510_s23 }
 0x2d7   : > { %1301 = vperm.xlu1 %1477, %v1574_v5  }
 0x339   : > { %v1063_v52 = vpop.permute.xlu1 %1062  ;;  %v1175_v56 = vpop.permute.xlu0 %1174 }
 0x33d   : > { %v1065_v53 = vpop.permute.xlu1 %1064  ;;  %v1240_v4 = vpop.permute.xlu0 %1239 }
 0x33e   : > { %v1066_v54 = vsel %vm196_vm1, %v1063_v52, %v1065_v53  ;;  %1086 = vmatprep.subr.bf16.mxu1 %v1065_v53 }
 0x33f   : > { %1087 = vmatpush1.bf16.msra.mxu1 %v1066_v54 }
 0x341   : > { %v1177_v57 = vpop.permute.xlu1 %1176 }
 0x342   : > { %v1178_v58 = vsel %vm378_vm3, %v1175_v56, %v1177_v57  ;;  %1438 = vmatmul.mubr.msk.bf16.vlgmr.msra.gmra.mxu1 %vm200_vm0, %v1494_v55  ;;  %1198 = vmatprep.subr.bf16.mxu1 %v1177_v57 }
 0x343   : > { %1199 = vmatpush1.bf16.msra.mxu1 %v1178_v58  ;;  %1216 = vmatprep.mubr.bf16.mxu1 %v1506_v0 }
 0x345   : > { %v1242_v5 = vpop.permute.xlu1 %1241 }
 0x346   : > { %v1243_v59 = vsel %vm444_vm4, %v1240_v4, %v1242_v5  ;;  %1263 = vmatprep.subr.bf16.mxu0 %v1242_v5 }
 0x347   : > { %1264 = vmatpush1.bf16.msra.mxu0 %v1243_v59 }
 0x34a   : > { %1444 = vmatmul.mubr.msk.bf16.vlgmr.msra.gmra.mxu1 %vm200_vm0, %v1496_v60  ;;  %1448 = vmatmul.mubr.msk.bf16.vlgmr.msra.gmra.mxu0 %vm200_vm0, %v1497_v61  ;;  %v1298_v13 = vpop.permute.xlu0 %1297 }
 0x352   : > { %v1302_v26 = vpop.permute.xlu1 %1301 }
 0x38d   : > { %v1157_v62 = vpop.f32.mrf.mxu0 }
 0x38f   : > { %v1159_v0 = vpop.f32.mrf.mxu0 }
 0x391   : > { %v1161_v2 = vpop.f32.mrf.mxu0 }
 0x393   : > { %v1163_v7 = vpop.f32.mrf.mxu0 }
 0x402   : > { %v1106_v63 = vpop.f32.mrf.mxu1 }
 0x403   : > { %v1158_v8 = vadd.f32 %v1157_v62, %v1106_v63 }
 0x404   : > { %v1108_v1 = vpop.f32.mrf.mxu1 }
 0x405   : > { %v1160_v11 = vadd.f32 %v1159_v0, %v1108_v1 }
 0x406   : > { %v1110_v3 = vpop.f32.mrf.mxu1 }
 0x407   : > { %v1162_v16 = vadd.f32 %v1161_v2, %v1110_v3 }
 0x408   : > { %v1112_v6 = vpop.f32.mrf.mxu1 }
 0x409   : > { %v1164_v21 = vadd.f32 %v1163_v7, %v1112_v6 }
 0x40a   : > { %v1218_v9 = vpop.f32.mrf.mxu1  ;;  %v1283_v10 = vpop.f32.mrf.mxu0 }
 0x40b   : > { %v1227_v12 = vadd.f32 %v1218_v9, %v1158_v8 }
 0x40c   : > { %v1220_v14 = vpop.f32.mrf.mxu1  ;;  %v1285_v15 = vpop.f32.mrf.mxu0 }
 0x40d   : > { %v1292_v17 = vadd.f32 %v1283_v10, %v1227_v12  ;;  %v1228_v18 = vadd.f32 %v1220_v14, %v1160_v11 }
 0x40e   : > { %v1222_v19 = vpop.f32.mrf.mxu1  ;;  %v1287_v20 = vpop.f32.mrf.mxu0 }
 0x40f   : > { %v1293_v22 = vadd.f32 %v1285_v15, %v1228_v18  ;;  %v1304_v23 = vadd.f32 %v1298_v13, %v1292_v17  ;;  %v1229_v24 = vadd.f32 %v1222_v19, %v1162_v16 }
 0x410   : > { %v1224_v25 = vpop.f32.mrf.mxu1  ;;  %v1289_v31 = vpop.f32.mrf.mxu0 }
 0x411   : > { %v1305_v27 = vadd.f32 %v1298_v13, %v1293_v22  ;;  %v1308_v28 = vmax.f32 %v1304_v23, 0.0  ;;  %v1294_v29 = vadd.f32 %v1287_v20, %v1229_v24  ;;  %v1230_v30 = vadd.f32 %v1224_v25, %v1164_v21 }
 0x413   : > { %v1309_v32 = vmax.f32 %v1305_v27, 0.0  ;;  %1312 = vst [vmem:[%s170_s17] sm:$0xff] %v1308_v28  ;;  %v1295_v33 = vadd.f32 %v1289_v31, %v1230_v30  ;;  %v1306_v34 = vadd.f32 %v1302_v26, %v1294_v29 }
 0x415   : > { %1314 = vst.msk [vmem:[%s170_s17 + $0x8] sm:$0xff] %vm1313_vm9, %v1309_v32  ;;  %v1307_v35 = vadd.f32 %v1302_v26, %v1295_v33  ;;  %v1310_v36 = vmax.f32 %v1306_v34, 0.0 }
 0x417   : > { %v1311_v37 = vmax.f32 %v1307_v35, 0.0  ;;  %1315 = vst [vmem:[%s170_s17 + $0x10] sm:$0xff] %v1310_v36 }
 0x419   : > { %1316 = vst.msk [vmem:[%s170_s17 + $0x18] sm:$0xff] %vm1313_vm9, %v1311_v37 }
 0x41a PF: > { %s13_s12 = sadd.s32 1, %s1504_s12  }
 0x41b   : > { %p10_p4 = scmp.ge.s32.totalorder %s13_s12, 4  }
 0x41d   :  { %12 = sbr.rel (!%p10_p4) target bundleno = 1 (0x1), region = 78 }

</bundles_post_ra>
